<compile_context>
chip_gen: v5e
topology: v5e:2x2
jax: 0.10.0
libtpu: 0.0.40
codegen_flags: <defaults>
</compile_context>

<pallas_src>
import functools

import jax
import jax.numpy as jnp
from jax.experimental import pallas as pl
from jax.experimental.pallas import tpu as pltpu


def _round_up(a, b):
    return (a + b - 1) // b * b


def conv_bn_stats_kernel(x_ref, w_ref, b_ref, y_ref, sum_ref, ssq_ref, *,
                         valid_rows, block_m):
    # bf16 x bf16 -> f32 accumulate on the MXU (explicit precision choice).
    y = jnp.dot(x_ref[...], w_ref[...], preferred_element_type=jnp.float32)
    y = y + b_ref[...]
    if valid_rows % block_m != 0:
        # Zero rows that are padding so they drop out of the BN statistics
        # (and of the final output, which is sliced back to P rows anyway).
        row = (pl.program_id(0) * block_m
               + jax.lax.broadcasted_iota(jnp.int32, y.shape, 0))
        y = jnp.where(row < valid_rows, y, 0.0)
    y_ref[...] = y
    # Per-block partial statistics (sum and sum-of-squares are globally
    # combinable, unlike per-block means).
    sum_ref[...] = jnp.sum(y, axis=0).reshape(1, 1, -1)
    ssq_ref[...] = jnp.sum(y * y, axis=0).reshape(1, 1, -1)


def bn_apply_kernel(y_ref, scale_ref, shift_ref, o_ref):
    o_ref[...] = (y_ref[...] * scale_ref[...] + shift_ref[...]).astype(o_ref.dtype)


def conv_patch_embedding_3d(x, weight, bias, gamma, beta, patch_size,
                            eps=1e-5, tm=256):
    N, C, D, H, W = x.shape
    pd, ph, pw = patch_size
    E = weight.shape[0]
    Dp, Hp, Wp = D // pd, H // ph, W // pw
    P = N * Dp * Hp * Wp
    K = C * pd * ph * pw

    # --- glue: patchify input and flatten the conv weight (layout only) ---
    # TODO(synk): fold this patch gather into the kernel DMA (grid over
    # (n, d', h') with full-W blocks) to avoid the XLA relayout copy of x.
    xp = x.reshape(N, C, Dp, pd, Hp, ph, Wp, pw)
    xp = xp.transpose(0, 2, 4, 6, 1, 3, 5, 7)          # (N, D', H', W', C, pd, ph, pw)
    xm = xp.reshape(P, K).astype(jnp.bfloat16)          # MXU-native dtype
    wm = weight.reshape(E, K).T.astype(jnp.bfloat16)    # (K, E), VMEM-resident
    bm = bias.reshape(1, E).astype(jnp.float32)

    # Clamp the row tile for tiny inputs and pad P up to a multiple of it.
    tm = min(tm, _round_up(P, 16))
    P_pad = _round_up(P, tm)
    if P_pad != P:
        xm = jnp.pad(xm, ((0, P_pad - P), (0, 0)))
    n_blocks = P_pad // tm

    kernel1 = functools.partial(conv_bn_stats_kernel, valid_rows=P, block_m=tm)

    # --- kernel 1: conv-as-matmul + bias + BN partial stats ---
    y, sums, ssqs = pl.pallas_call(
        kernel1,
        out_shape=(
            jax.ShapeDtypeStruct((P_pad, E), jnp.float32),
            jax.ShapeDtypeStruct((n_blocks, 1, E), jnp.float32),
            jax.ShapeDtypeStruct((n_blocks, 1, E), jnp.float32),
        ),
        grid_spec=pltpu.PrefetchScalarGridSpec(
            num_scalar_prefetch=0,
            grid=(n_blocks,),
            in_specs=[
                pl.BlockSpec((tm, K), lambda i: (i, 0)),   # streamed X rows
                pl.BlockSpec((K, E), lambda i: (0, 0)),    # resident weight
                pl.BlockSpec((1, E), lambda i: (0, 0)),    # resident bias
            ],
            out_specs=[
                pl.BlockSpec((tm, E), lambda i: (i, 0)),
                pl.BlockSpec((1, 1, E), lambda i: (i, 0, 0)),
                pl.BlockSpec((1, 1, E), lambda i: (i, 0, 0)),
            ],
        ),
        compiler_params=pltpu.CompilerParams(
            dimension_semantics=("parallel",)),
    )(xm, wm, bm)

    # --- tiny per-channel combine (train-mode BatchNorm3d batch statistics) ---
    mean = jnp.sum(sums, axis=(0, 1)) / P                  # (E,)
    var = jnp.sum(ssqs, axis=(0, 1)) / P - mean * mean     # biased variance
    inv = jax.lax.rsqrt(var + eps)
    scale = (gamma * inv).reshape(1, E).astype(jnp.float32)
    shift = (beta - mean * gamma * inv).reshape(1, E).astype(jnp.float32)

    # --- kernel 2: apply the normalization, tiled over P ---
    yn = pl.pallas_call(
        bn_apply_kernel,
        out_shape=jax.ShapeDtypeStruct((P_pad, E), jnp.float32),
        grid_spec=pltpu.PrefetchScalarGridSpec(
            num_scalar_prefetch=0,
            grid=(n_blocks,),
            in_specs=[
                pl.BlockSpec((tm, E), lambda i: (i, 0)),
                pl.BlockSpec((1, E), lambda i: (0, 0)),
                pl.BlockSpec((1, E), lambda i: (0, 0)),
            ],
            out_specs=pl.BlockSpec((tm, E), lambda i: (i, 0)),
        ),
        compiler_params=pltpu.CompilerParams(
            dimension_semantics=("parallel",)),
    )(y, scale, shift)

    # --- glue: back to PyTorch layout (N, E, D', H', W') ---
    return yn[:P].reshape(N, Dp, Hp, Wp, E).transpose(0, 4, 1, 2, 3)


def reference(x, weight, bias, gamma, beta, patch_size, eps=1e-5):
    y = jax.lax.conv_general_dilated(
        x, weight, window_strides=patch_size, padding="VALID",
        dimension_numbers=("NCDHW", "OIDHW", "NCDHW"),
        precision=jax.lax.Precision.HIGHEST)
    y = y + bias.reshape(1, -1, 1, 1, 1)
    mean = jnp.mean(y, axis=(0, 2, 3, 4), keepdims=True)
    var = jnp.mean((y - mean) ** 2, axis=(0, 2, 3, 4), keepdims=True)
    yn = (y - mean) * jax.lax.rsqrt(var + eps)
    return yn * gamma.reshape(1, -1, 1, 1, 1) + beta.reshape(1, -1, 1, 1, 1)


if __name__ == "__main__":
    def run_case(N, C, D, H, W, E, patch, tm, key):
        kx, kw, kb = jax.random.split(key, 3)
        x = jax.random.normal(kx, (N, C, D, H, W), dtype=jnp.float32)
        fan_in = C * patch[0] * patch[1] * patch[2]
        weight = jax.random.normal(kw, (E, C, *patch),
                                   dtype=jnp.float32) / jnp.sqrt(fan_in)
        bias = jax.random.normal(kb, (E,), dtype=jnp.float32) * 0.01
        gamma = jnp.ones((E,), dtype=jnp.float32)   # BatchNorm3d default weight
        beta = jnp.zeros((E,), dtype=jnp.float32)   # BatchNorm3d default bias

        out = conv_patch_embedding_3d(x, weight, bias, gamma, beta, patch, tm=tm)
        out = jax.block_until_ready(out)
        ref = reference(x, weight, bias, gamma, beta, patch)

        Dp, Hp, Wp = D // patch[0], H // patch[1], W // patch[2]
        assert out.shape == (N, E, Dp, Hp, Wp), out.shape
        err = float(jnp.max(jnp.abs(out - ref)))
        assert err < 3e-2, err   # bf16 MXU inputs, f32 accumulate

    key = jax.random.PRNGKey(0)
    k1, k2 = jax.random.split(key)

    # Base case: Conv3d(in=2, embed=128, patch=(8,8,8)), P=16 rows (single block).
    run_case(2, 2, 16, 16, 16, 128, (8, 8, 8), tm=256, key=k1)
    # Padded / multi-block case: P=36 rows, tm=16 -> P_pad=48, 3 row blocks —
    # exercises the row mask, the multi-block stats combine and resident-W reuse.
    run_case(2, 2, 24, 24, 16, 128, (8, 8, 8), tm=16, key=k2)

    print("KERNEL_OK")
</pallas_src>

<mosaic_0001>
module attributes {stable_mosaic.version = 11 : i64} {
  func.func @conv_bn_stats_kernel(%arg0: i32, %arg1: memref<16x1024xbf16, #tpu.memory_space<vmem>>, %arg2: memref<1024x128xbf16, #tpu.memory_space<vmem>>, %arg3: memref<1x128xf32, #tpu.memory_space<vmem>>, %arg4: memref<16x128xf32, #tpu.memory_space<vmem>>, %arg5: memref<1x1x128xf32, #tpu.memory_space<vmem>>, %arg6: memref<1x1x128xf32, #tpu.memory_space<vmem>>) attributes {dimension_semantics = [#tpu.dimension_semantics<parallel>], iteration_bounds = array<i64: 1>, scalar_prefetch = 0 : i64, scratch_operands = 0 : i64, tpu.core_type = #tpu.core_type<tc>, window_params = [{transform_indices = @transform_0, window_bounds = array<i64: 16, 1024>}, {pipeline_mode = #tpu.pipeline_mode<synchronous>, transform_indices = @transform_1, window_bounds = array<i64: 1024, 128>}, {pipeline_mode = #tpu.pipeline_mode<synchronous>, transform_indices = @transform_2, window_bounds = array<i64: 1, 128>}, {transform_indices = @transform_3, window_bounds = array<i64: 16, 128>}, {transform_indices = @transform_4, window_bounds = array<i64: 1, 1, 128>}, {transform_indices = @transform_5, window_bounds = array<i64: 1, 1, 128>}]} {
    %c0 = arith.constant 0 : index
    %c0_0 = arith.constant 0 : index
    %0 = vector.load %arg1[%c0, %c0_0] : memref<16x1024xbf16, #tpu.memory_space<vmem>>, vector<16x1024xbf16>
    %c0_1 = arith.constant 0 : index
    %c0_2 = arith.constant 0 : index
    %1 = vector.load %arg2[%c0_1, %c0_2] : memref<1024x128xbf16, #tpu.memory_space<vmem>>, vector<1024x128xbf16>
    %cst = arith.constant dense<0.000000e+00> : vector<16x128xf32>
    %2 = tpu.matmul %0, %1, %cst {dimension_numbers = #tpu.dot_dimension_numbers<[1], [0], [0], [1], [0, 0, 1, 1], [], []>} : vector<16x1024xbf16>, vector<1024x128xbf16>, vector<16x128xf32> -> vector<16x128xf32>
    %c0_3 = arith.constant 0 : index
    %c0_4 = arith.constant 0 : index
    %3 = vector.load %arg3[%c0_3, %c0_4] : memref<1x128xf32, #tpu.memory_space<vmem>>, vector<1x128xf32>
    %4 = vector.broadcast %3 : vector<1x128xf32> to vector<16x128xf32>
    %5 = arith.addf %2, %4 : vector<16x128xf32>
    %c0_5 = arith.constant 0 : index
    %c0_6 = arith.constant 0 : index
    %6 = vector.load %arg4[%c0_5, %c0_6] : memref<16x128xf32, #tpu.memory_space<vmem>>, vector<16x128xf32>
    tpu.vector_store %arg4[%c0_5, %c0_6], %5 {strides = array<i32>} : memref<16x128xf32, #tpu.memory_space<vmem>>, vector<16x128xf32>,
    %cst_7 = arith.constant dense<0.000000e+00> : vector<128xf32>
    %7 = vector.multi_reduction <add>, %5, %cst_7 [0] : vector<16x128xf32> to vector<128xf32>
    %8 = vector.shape_cast %7 : vector<128xf32> to vector<1x1x128xf32>
    %c0_8 = arith.constant 0 : index
    %c0_9 = arith.constant 0 : index
    %c0_10 = arith.constant 0 : index
    %9 = vector.load %arg5[%c0_8, %c0_9, %c0_10] : memref<1x1x128xf32, #tpu.memory_space<vmem>>, vector<1x1x128xf32>
    tpu.vector_store %arg5[%c0_8, %c0_9, %c0_10], %8 {strides = array<i32>} : memref<1x1x128xf32, #tpu.memory_space<vmem>>, vector<1x1x128xf32>,
    %10 = arith.mulf %5, %5 : vector<16x128xf32>
    %cst_11 = arith.constant dense<0.000000e+00> : vector<128xf32>
    %11 = vector.multi_reduction <add>, %10, %cst_11 [0] : vector<16x128xf32> to vector<128xf32>
    %12 = vector.shape_cast %11 : vector<128xf32> to vector<1x1x128xf32>
    %c0_12 = arith.constant 0 : index
    %c0_13 = arith.constant 0 : index
    %c0_14 = arith.constant 0 : index
    %13 = vector.load %arg6[%c0_12, %c0_13, %c0_14] : memref<1x1x128xf32, #tpu.memory_space<vmem>>, vector<1x1x128xf32>
    tpu.vector_store %arg6[%c0_12, %c0_13, %c0_14], %12 {strides = array<i32>} : memref<1x1x128xf32, #tpu.memory_space<vmem>>, vector<1x1x128xf32>,
    return
  }
  func.func @transform_0(%arg0: i32) -> (i32, i32) {
    %c0_i32 = arith.constant 0 : i32
    %c0_i32_0 = arith.constant 0 : i32
    return %arg0, %c0_i32 : i32, i32
  }
  func.func @transform_1(%arg0: i32) -> (i32, i32) {
    %c0_i32 = arith.constant 0 : i32
    %c0_i32_0 = arith.constant 0 : i32
    %c0_i32_1 = arith.constant 0 : i32
    return %c0_i32, %c0_i32_0 : i32, i32
  }
  func.func @transform_2(%arg0: i32) -> (i32, i32) {
    %c0_i32 = arith.constant 0 : i32
    %c0_i32_0 = arith.constant 0 : i32
    %c0_i32_1 = arith.constant 0 : i32
    return %c0_i32, %c0_i32_0 : i32, i32
  }
  func.func @transform_3(%arg0: i32) -> (i32, i32) {
    %c0_i32 = arith.constant 0 : i32
    %c0_i32_0 = arith.constant 0 : i32
    return %arg0, %c0_i32 : i32, i32
  }
  func.func @transform_4(%arg0: i32) -> (i32, i32, i32) {
    %c0_i32 = arith.constant 0 : i32
    %c0_i32_0 = arith.constant 0 : i32
    %c0_i32_1 = arith.constant 0 : i32
    return %arg0, %c0_i32, %c0_i32_0 : i32, i32, i32
  }
  func.func @transform_5(%arg0: i32) -> (i32, i32, i32) {
    %c0_i32 = arith.constant 0 : i32
    %c0_i32_0 = arith.constant 0 : i32
    %c0_i32_1 = arith.constant 0 : i32
    return %arg0, %c0_i32, %c0_i32_0 : i32, i32, i32
  }
}

</mosaic_0001>

<bundles_post_ra>
// kernel: tpu_custom_call.1
= control target key start
LH: loop header
LB: loop body
LE: loop exit
PB: predicated region body
PF: predicated region fallthrough
CT: control target
= control target key end

     0   :  { %11 = vsyncpa [#allocation3], 0  ;;  %s1357_s0 = inlined_call_operand.hbm [shape: bf16[16,1024], index: 0, kind: input, shape index: {}]   ;;  %s1358_s1 = inlined_call_operand.hbm [shape: bf16[1024,128], index: 1, kind: input, shape index: {}]   ;;  %s1359_s2 = inlined_call_operand.vmem [shape: f32[1,128], index: 2, kind: input, shape index: {}]   ;;  %s1360_s3 = inlined_call_operand.hbm [shape: f32[16,128], index: 3, kind: output, shape index: {0}]   ;;  %s1361_s4 = inlined_call_operand.hbm [shape: f32[1,1,128], index: 4, kind: output, shape index: {1}]   ;;  %s1362_s5 = inlined_call_operand.hbm [shape: f32[1,1,128], index: 5, kind: output, shape index: {2}]  }
   0x1   :  { %12 = vsyncpa [#allocation6], 0 }
   0x2   :  { %13 = vsyncpa [#allocation4], 0 }
   0x3   :  { %14 = vsyncpa [#allocation9], 0  ;;  %s19_s20 = sshll.u32 %s1357_s0, 4  ;;  %s1298_s21 = smov [#allocation2]   ;;  %s20_s20 = int_to_ptr.hbm [resolvable:$true] %s19_s20 }
   0x4   :  { %s21_s22 = sshll.u32 %s1298_s21, 4  ;;  %s32_s25 = sshll.u32 %s1358_s1, 4  ;;  %s22_s22 = int_to_ptr.vmem [resolvable:$true] %s21_s22  ;;  %s33_s25 = int_to_ptr.hbm [resolvable:$true] %s32_s25 }
   0x5   :  { %s1299_s26 = smov 512   ;;  %s1300_s27 = smov 32  }
   0x6   :  { %27 = dma.hbm_to_vmem [thread:$0]  %s20_s20, 1024, %s22_s22, [#allocation3], %s1299_s26, %s1299_s26, %s1300_s27  }
   0x7   :  { %s1301_s28 = smov [#allocation5]   ;;  %s1302_s30 = smov 64  }
   0x8   :  { %s34_s29 = sshll.u32 %s1301_s28, 4  ;;  %s1303_s6 = smov 4   ;;  %s35_s29 = int_to_ptr.vmem [resolvable:$true] %s34_s29 }
   0x9   :  { %40 = dma.hbm_to_vmem [thread:$0]  %s33_s25, 8192, %s35_s29, [#allocation6], %s1302_s30, %s1302_s30, %s1303_s6  }
   0xa   :  { %1290 = dma.done.wait [#allocation3], 1024  }
   0xb   :  { %1291 = vsyncadd [#allocation3], 4294966272 }
   0xc   :  { %1292 = dma.done.wait [#allocation6], 8192  }
   0xd   :  { %1293 = vsyncadd [#allocation6], 4294959104  ;;  %v1101_v0 = vld [vmem:[#allocation5 + $0x38] sm:$0xff]  ;;  %v1100_v4 = vld [vmem:[#allocation5 + $0x30] sm:$0xff]  ;;  %s753_s10 = sshll.u32 %s1360_s3, 4  ;;  %s1305_s11 = smov 128   ;;  %s754_s10 = int_to_ptr.hbm [resolvable:$true] %s753_s10 }
   0xe   :  { %v1109_v1 = vld [vmem:[#allocation5 + $0x78] sm:$0xff]  ;;  %615 = vmatpush.bf16.msra.mxu0 %v1101_v0  ;;  %v1108_v5 = vld [vmem:[#allocation5 + $0x70] sm:$0xff]  ;;  %v1099_v8 = vld [vmem:[#allocation5 + $0x28] sm:$0xff]  ;;  %s1306_s12 = smov 8   ;;  %s1307_s3 = smov [#allocation8]  }
   0xf   :  { %v1117_v2 = vld [vmem:[#allocation5 + $0xb8] sm:$0xff]  ;;  %629 = vmatpush.bf16.msra.mxu1 %v1109_v1  ;;  %v1116_v6 = vld [vmem:[#allocation5 + $0xb0] sm:$0xff]  ;;  %v1107_v9 = vld [vmem:[#allocation5 + $0x68] sm:$0xff]  ;;  %s765_s13 = sshll.u32 %s1307_s3, 4  ;;  %s767_s16 = sshll.u32 %s1361_s4, 4  ;;  %s766_s13 = int_to_ptr.vmem [resolvable:$true] %s765_s13  ;;  %s768_s16 = int_to_ptr.hbm [resolvable:$true] %s767_s16 }
  0x10   :  { %v1125_v3 = vld [vmem:[#allocation5 + $0xf8] sm:$0xff]  ;;  %643 = vmatpush.bf16.msra.mxu2 %v1117_v2  ;;  %v1124_v7 = vld [vmem:[#allocation5 + $0xf0] sm:$0xff]  ;;  %v1115_v10 = vld [vmem:[#allocation5 + $0xa8] sm:$0xff]  ;;  %s1308_s17 = smov [#allocation10]   ;;  %s778_s21 = sshll.u32 %s1362_s5, 4  ;;  %s779_s21 = int_to_ptr.hbm [resolvable:$true] %s778_s21 }
  0x11   :  { %657 = vmatpush.bf16.msra.mxu3 %v1125_v3  ;;  %v1123_v11 = vld [vmem:[#allocation5 + $0xe8] sm:$0xff]  ;;  %v1098_v12 = vld [vmem:[#allocation5 + $0x20] sm:$0xff]  ;;  %v1097_v16 = vld [vmem:[#allocation5 + $0x18] sm:$0xff]  ;;  %s776_s18 = sshll.u32 %s1308_s17, 4  ;;  %s777_s18 = int_to_ptr.vmem [resolvable:$true] %s776_s18 }
  0x12   :  { %616 = vmatpush.bf16.msra.mxu0 %v1100_v4  ;;  %v1106_v13 = vld [vmem:[#allocation5 + $0x60] sm:$0xff]  ;;  %v1105_v17 = vld [vmem:[#allocation5 + $0x58] sm:$0xff]  ;;  %v1096_v20 = vld [vmem:[#allocation5 + $0x10] sm:$0xff] }
  0x13   :  { %630 = vmatpush.bf16.msra.mxu1 %v1108_v5  ;;  %v1114_v14 = vld [vmem:[#allocation5 + $0xa0] sm:$0xff]  ;;  %v1113_v18 = vld [vmem:[#allocation5 + $0x98] sm:$0xff]  ;;  %v1104_v21 = vld [vmem:[#allocation5 + $0x50] sm:$0xff] }
  0x14   :  { %644 = vmatpush.bf16.msra.mxu2 %v1116_v6  ;;  %v1122_v15 = vld [vmem:[#allocation5 + $0xe0] sm:$0xff]  ;;  %v1121_v19 = vld [vmem:[#allocation5 + $0xd8] sm:$0xff]  ;;  %v1112_v22 = vld [vmem:[#allocation5 + $0x90] sm:$0xff] }
  0x15   :  { %658 = vmatpush.bf16.msra.mxu3 %v1124_v7  ;;  %v1120_v23 = vld [vmem:[#allocation5 + $0xd0] sm:$0xff]  ;;  %v1095_v24 = vld [vmem:[#allocation5 + $0x8] sm:$0xff]  ;;  %v1094_v28 = vld [vmem:[#allocation5] sm:$0xff] }
  0x16   :  { %617 = vmatpush.bf16.msra.mxu0 %v1099_v8  ;;  %v1103_v25 = vld [vmem:[#allocation5 + $0x48] sm:$0xff]  ;;  %v1102_v29 = vld [vmem:[#allocation5 + $0x40] sm:$0xff]  ;;  %v1133_v32 = vld [vmem:[#allocation5 + $0x138] sm:$0xff] }
  0x17   :  { %631 = vmatpush.bf16.msra.mxu1 %v1107_v9  ;;  %v1111_v26 = vld [vmem:[#allocation5 + $0x88] sm:$0xff]  ;;  %v1110_v30 = vld [vmem:[#allocation5 + $0x80] sm:$0xff]  ;;  %v1141_v33 = vld [vmem:[#allocation5 + $0x178] sm:$0xff] }
  0x18   :  { %645 = vmatpush.bf16.msra.mxu2 %v1115_v10  ;;  %v1119_v27 = vld [vmem:[#allocation5 + $0xc8] sm:$0xff]  ;;  %v1118_v31 = vld [vmem:[#allocation5 + $0xc0] sm:$0xff]  ;;  %v1149_v42 = vld [vmem:[#allocation5 + $0x1b8] sm:$0xff] }
  0x19   :  { %659 = vmatpush.bf16.msra.mxu3 %v1123_v11  ;;  %v808_v34 = vld [vmem:[#allocation2 + $0x8] sm:$0xf]  ;;  %v800_v36 = vld [vmem:[#allocation2] sm:$0xf]  ;;  %v1087_v38 = vld [vmem:[#allocation2 + $0xc] sm:$0xf] }
  0x1a   :  { %618 = vmatpush.bf16.msra.mxu0 %v1098_v12  ;;  %v1091_v35 = vld [vmem:[#allocation2 + $0x24] sm:$0xf0]  ;;  %v1090_v37 = vld [vmem:[#allocation2 + $0x1c] sm:$0xf0]  ;;  %v810_v39 = vld [vmem:[#allocation2 + $0x28] sm:$0xf0] }
  0x1b   :  { %632 = vmatpush.bf16.msra.mxu1 %v1106_v13  ;;  %v1086_v40 = vld [vmem:[#allocation2 + $0x4] sm:$0xf]  ;;  %v1157_v43 = vld [vmem:[#allocation5 + $0x1f8] sm:$0xff]  ;;  %v809_v44 = vor.u32 %v1091_v35, %v808_v34  ;;  %v801_v45 = vor.u32 %v1090_v37, %v800_v36  ;;  %v813_v46 = vor.u32 %v1087_v38, %v810_v39  ;;  %v1132_v48 = vld [vmem:[#allocation5 + $0x130] sm:$0xff] }
  0x1c   :  { %646 = vmatpush.bf16.msra.mxu2 %v1114_v14  ;;  %v802_v41 = vld [vmem:[#allocation2 + $0x20] sm:$0xf0]  ;;  %v1140_v49 = vld [vmem:[#allocation5 + $0x170] sm:$0xff]  ;;  %v1131_v52 = vld [vmem:[#allocation5 + $0x128] sm:$0xff] }
  0x1d   :  { %660 = vmatpush.bf16.msra.mxu3 %v1122_v15  ;;  %v805_v47 = vor.u32 %v1086_v40, %v802_v41  ;;  %v1148_v50 = vld [vmem:[#allocation5 + $0x1b0] sm:$0xff]  ;;  %v1139_v53 = vld [vmem:[#allocation5 + $0x168] sm:$0xff]  ;;  %v1130_v56 = vld [vmem:[#allocation5 + $0x120] sm:$0xff] }
  0x1e   :  { %619 = vmatpush.bf16.msra.mxu0 %v1097_v16  ;;  %v1156_v51 = vld [vmem:[#allocation5 + $0x1f0] sm:$0xff]  ;;  %v1147_v54 = vld [vmem:[#allocation5 + $0x1a8] sm:$0xff]  ;;  %v1138_v57 = vld [vmem:[#allocation5 + $0x160] sm:$0xff] }
  0x1f   :  { %633 = vmatpush.bf16.msra.mxu1 %v1105_v17  ;;  %v1155_v55 = vld [vmem:[#allocation5 + $0x1e8] sm:$0xff]  ;;  %v1146_v58 = vld [vmem:[#allocation5 + $0x1a0] sm:$0xff]  ;;  %v1129_v60 = vld [vmem:[#allocation5 + $0x118] sm:$0xff] }
  0x20   :  { %647 = vmatpush.bf16.msra.mxu2 %v1113_v18  ;;  %v1154_v59 = vld [vmem:[#allocation5 + $0x1e0] sm:$0xff]  ;;  %v1137_v61 = vld [vmem:[#allocation5 + $0x158] sm:$0xff]  ;;  %v1128_v0 = vld [vmem:[#allocation5 + $0x110] sm:$0xff] }
  0x21   :  { %661 = vmatpush.bf16.msra.mxu3 %v1121_v19  ;;  %v1145_v62 = vld [vmem:[#allocation5 + $0x198] sm:$0xff]  ;;  %v1136_v1 = vld [vmem:[#allocation5 + $0x150] sm:$0xff]  ;;  %v1127_v4 = vld [vmem:[#allocation5 + $0x108] sm:$0xff] }
  0x22   :  { %620 = vmatpush.bf16.msra.mxu0 %v1096_v20  ;;  %v1153_v63 = vld [vmem:[#allocation5 + $0x1d8] sm:$0xff]  ;;  %v1144_v2 = vld [vmem:[#allocation5 + $0x190] sm:$0xff]  ;;  %v1135_v5 = vld [vmem:[#allocation5 + $0x148] sm:$0xff] }
  0x23   :  { %634 = vmatpush.bf16.msra.mxu1 %v1104_v21  ;;  %v1152_v3 = vld [vmem:[#allocation5 + $0x1d0] sm:$0xff]  ;;  %v1143_v6 = vld [vmem:[#allocation5 + $0x188] sm:$0xff]  ;;  %v1126_v8 = vld [vmem:[#allocation5 + $0x100] sm:$0xff] }
  0x24   :  { %648 = vmatpush.bf16.msra.mxu2 %v1112_v22  ;;  %v1151_v7 = vld [vmem:[#allocation5 + $0x1c8] sm:$0xff]  ;;  %v1134_v9 = vld [vmem:[#allocation5 + $0x140] sm:$0xff]  ;;  %v816_v12 = vld [vmem:[#allocation2 + $0x10] sm:$0xf] }
  0x25   :  { %662 = vmatpush.bf16.msra.mxu3 %v1120_v23  ;;  %v1142_v10 = vld [vmem:[#allocation5 + $0x180] sm:$0xff]  ;;  %v1092_v13 = vld [vmem:[#allocation2 + $0x2c] sm:$0xf0]  ;;  %v1088_v14 = vld [vmem:[#allocation2 + $0x14] sm:$0xf] }
  0x26   :  { %621 = vmatpush.bf16.msra.mxu0 %v1095_v24  ;;  %v1150_v11 = vld [vmem:[#allocation5 + $0x1c0] sm:$0xff]  ;;  %v818_v15 = vld [vmem:[#allocation2 + $0x30] sm:$0xf0]  ;;  %v824_v16 = vld [vmem:[#allocation2 + $0x18] sm:$0xf]  ;;  %v817_v20 = vor.u32 %v1092_v13, %v816_v12 }
  0x27   :  { %635 = vmatpush.bf16.msra.mxu1 %v1103_v25  ;;  %v1093_v17 = vld [vmem:[#allocation2 + $0x34] sm:$0xf0]  ;;  %v1089_v18 = vld [vmem:[#allocation2 + $0x1c] sm:$0xf]  ;;  %v821_v21 = vor.u32 %v1088_v14, %v818_v15  ;;  %v1169_v25 = vld [vmem:[%s1359_s2] ss:$0 sm:$0xff] }
  0x28   :  { %649 = vmatpush.bf16.msra.mxu2 %v1111_v26  ;;  %v826_v19 = vld [vmem:[#allocation2 + $0x38] sm:$0xf0]  ;;  %v825_v22 = vor.u32 %v1093_v17, %v824_v16  ;;  %s1304_s2 = smov [#allocation7]  }
  0x29   :  { %663 = vmatpush.bf16.msra.mxu3 %v1119_v27  ;;  %v829_v23 = vor.u32 %v1089_v18, %v826_v19  ;;  %s751_s7 = sshll.u32 %s1304_s2, 4  ;;  %s752_s7 = int_to_ptr.vmem [resolvable:$true] %s751_s7 }
  0x2a   :  { %622 = vmatpush.bf16.msra.mxu0 %v1094_v28 }
  0x2b   :  { %636 = vmatpush.bf16.msra.mxu1 %v1102_v29 }
  0x2c   :  { %650 = vmatpush.bf16.msra.mxu2 %v1110_v30 }
  0x2d   :  { %664 = vmatpush.bf16.msra.mxu3 %v1118_v31  ;;  %623 = vmatmul.bf16.vlgmr.msra.gmra.mxu0 %v801_v45 }
  0x2e   :  { %671 = vmatpush.bf16.msrb.mxu0 %v1133_v32  ;;  %637 = vmatmul.bf16.vlgmr.msra.gmra.mxu1 %v805_v47 }
  0x2f   :  { %685 = vmatpush.bf16.msrb.mxu1 %v1141_v33  ;;  %651 = vmatmul.bf16.vlgmr.msra.gmra.mxu2 %v809_v44 }
  0x30   :  { %699 = vmatpush.bf16.msrb.mxu2 %v1149_v42  ;;  %665 = vmatmul.bf16.vlgmr.msra.gmra.mxu3 %v813_v46 }
  0x31   :  { %713 = vmatpush.bf16.msrb.mxu3 %v1157_v43 }
  0x32   :  { %672 = vmatpush.bf16.msrb.mxu0 %v1132_v48 }
  0x33   :  { %686 = vmatpush.bf16.msrb.mxu1 %v1140_v49 }
  0x34   :  { %700 = vmatpush.bf16.msrb.mxu2 %v1148_v50 }
  0x35   :  { %714 = vmatpush.bf16.msrb.mxu3 %v1156_v51 }
  0x36   :  { %673 = vmatpush.bf16.msrb.mxu0 %v1131_v52 }
  0x37   :  { %687 = vmatpush.bf16.msrb.mxu1 %v1139_v53 }
  0x38   :  { %701 = vmatpush.bf16.msrb.mxu2 %v1147_v54 }
  0x39   :  { %715 = vmatpush.bf16.msrb.mxu3 %v1155_v55 }
  0x3a   :  { %674 = vmatpush.bf16.msrb.mxu0 %v1130_v56 }
  0x3b   :  { %688 = vmatpush.bf16.msrb.mxu1 %v1138_v57 }
  0x3c   :  { %702 = vmatpush.bf16.msrb.mxu2 %v1146_v58 }
  0x3d   :  { %716 = vmatpush.bf16.msrb.mxu3 %v1154_v59 }
  0x3e   :  { %675 = vmatpush.bf16.msrb.mxu0 %v1129_v60 }
  0x3f   :  { %689 = vmatpush.bf16.msrb.mxu1 %v1137_v61 }
  0x40   :  { %703 = vmatpush.bf16.msrb.mxu2 %v1145_v62 }
  0x41   :  { %717 = vmatpush.bf16.msrb.mxu3 %v1153_v63 }
  0x42   :  { %676 = vmatpush.bf16.msrb.mxu0 %v1128_v0 }
  0x43   :  { %690 = vmatpush.bf16.msrb.mxu1 %v1136_v1 }
  0x44   :  { %704 = vmatpush.bf16.msrb.mxu2 %v1144_v2 }
  0x45   :  { %718 = vmatpush.bf16.msrb.mxu3 %v1152_v3 }
  0x46   :  { %677 = vmatpush.bf16.msrb.mxu0 %v1127_v4 }
  0x47   :  { %691 = vmatpush.bf16.msrb.mxu1 %v1135_v5 }
  0x48   :  { %705 = vmatpush.bf16.msrb.mxu2 %v1143_v6 }
  0x49   :  { %719 = vmatpush.bf16.msrb.mxu3 %v1151_v7 }
  0x4a   :  { %678 = vmatpush.bf16.msrb.mxu0 %v1126_v8 }
  0x4b   :  { %692 = vmatpush.bf16.msrb.mxu1 %v1134_v9 }
  0x4c   :  { %706 = vmatpush.bf16.msrb.mxu2 %v1142_v10 }
  0x4d   :  { %720 = vmatpush.bf16.msrb.mxu3 %v1150_v11  ;;  %679 = vmatmul.bf16.vlgmr.msrb.gmra.mxu0 %v817_v20 }
  0x4e   :  { %693 = vmatmul.bf16.vlgmr.msrb.gmra.mxu1 %v821_v21 }
  0x4f   :  { %707 = vmatmul.bf16.vlgmr.msrb.gmra.mxu2 %v825_v22 }
  0x50   :  { %721 = vmatmul.bf16.vlgmr.msrb.gmra.mxu3 %v829_v23 }
  0xaa   :  { %v624_v24 = vpop.f32.mrf.mxu0 }
  0xab   :  { %v638_v26 = vpop.f32.mrf.mxu1  ;;  %v625_v27 = vadd.f32 %v1169_v25, %v624_v24 }
  0xad   :  { %v639_v30 = vadd.f32 %v638_v26, %v625_v27 }
  0xb2   :  { %v652_v28 = vpop.f32.mrf.mxu2  ;;  %v626_v31 = vpop.f32.mrf.mxu0 }
  0xb3   :  { %v666_v29 = vpop.f32.mrf.mxu3  ;;  %v640_v32 = vpop.f32.mrf.mxu1  ;;  %v653_v33 = vadd.f32 %v652_v28, %v639_v30  ;;  %v627_v34 = vadd.f32 %v1169_v25, %v626_v31 }
  0xb5   :  { %v667_v37 = vadd.f32 %v666_v29, %v653_v33  ;;  %v641_v38 = vadd.f32 %v640_v32, %v627_v34 }
  0xba   :  { %v654_v35 = vpop.f32.mrf.mxu2 }
  0xbb   :  { %v668_v36 = vpop.f32.mrf.mxu3  ;;  %v655_v42 = vadd.f32 %v654_v35, %v641_v38 }
  0xbd   :  { %v669_v46 = vadd.f32 %v668_v36, %v655_v42 }
  0xca   :  { %v680_v39 = vpop.f32.mrf.mxu0 }
  0xcb   :  { %v681_v40 = vadd.f32 %v680_v39, %v667_v37  ;;  %v694_v41 = vpop.f32.mrf.mxu1 }
  0xcd   :  { %v695_v43 = vadd.f32 %v694_v41, %v681_v40 }
  0xd2   :  { %v708_v44 = vpop.f32.mrf.mxu2  ;;  %v682_v48 = vpop.f32.mrf.mxu0 }
  0xd3   :  { %v722_v45 = vpop.f32.mrf.mxu3  ;;  %v709_v47 = vadd.f32 %v708_v44, %v695_v43  ;;  %v683_v50 = vadd.f32 %v682_v48, %v669_v46  ;;  %v696_v51 = vpop.f32.mrf.mxu1 }
  0xd5   :  { %v723_v49 = vadd.f32 %v722_v45, %v709_v47  ;;  %v697_v52 = vadd.f32 %v696_v51, %v683_v50 }
  0xd7   :  { %727 = vst [vmem:[#allocation7] sm:$0xff] %v723_v49  ;;  %v737_v57 = vmul.f32 %v723_v49, %v723_v49 }
  0xda   :  { %v710_v53 = vpop.f32.mrf.mxu2 }
  0xdb   :  { %v711_v54 = vadd.f32 %v710_v53, %v697_v52  ;;  %v724_v55 = vpop.f32.mrf.mxu3 }
  0xdd   :  { %v725_v56 = vadd.f32 %v724_v55, %v711_v54 }
  0xdf   :  { %728 = vst [vmem:[#allocation7 + $0x8] sm:$0xff] %v725_v56  ;;  %v729_v58 = vadd.f32 %v725_v56, %v723_v49  ;;  %v738_v59 = vmul.f32 %v725_v56, %v725_v56 }
  0xe0   :  { %759 = dma.vmem_to_hbm [thread:$0]  %s752_s7, 256, %s754_s10, [#allocation4], %s1305_s11, %s1305_s11, %s1306_s12  }
  0xe1   :  { %v730_v60 = vrot.slane %v729_v58, 4  ;;  %v739_v61 = vadd.f32 %v738_v59, %v737_v57 }
  0xe3   :  { %v731_v62 = vadd.f32 %v730_v60, %v729_v58  ;;  %v740_v63 = vrot.slane %v739_v61, 4 }
  0xe5   :  { %v732_v0 = vrot.slane %v731_v62, 2  ;;  %v741_v1 = vadd.f32 %v740_v63, %v739_v61 }
  0xe7   :  { %v742_v2 = vrot.slane %v741_v1, 2  ;;  %v733_v3 = vadd.f32 %v732_v0, %v731_v62 }
  0xe9   :  { %v734_v4 = vrot.slane %v733_v3, 1  ;;  %v743_v5 = vadd.f32 %v742_v2, %v741_v1 }
  0xeb   :  { %v735_v6 = vadd.f32 %v734_v4, %v733_v3  ;;  %v744_v7 = vrot.slane %v743_v5, 1 }
  0xed   :  { %736 = vst [vmem:[#allocation8] sm:$0x1] %v735_v6  ;;  %v745_v8 = vadd.f32 %v744_v7, %v743_v5 }
  0xee   :  { %770 = dma.vmem_to_hbm [thread:$0]  %s766_s13, 16, %s768_s16, [#allocation9]  }
  0xef   :  { %746 = vst [vmem:[#allocation10] sm:$0x1] %v745_v8 }
  0xf0   :  { %781 = dma.vmem_to_hbm [thread:$0]  %s777_s18, 16, %s779_s21, [#allocation9]  }
  0xf1   :  { %1294 = dma.done.wait [#allocation4], 256  }
  0xf2   :  { %1295 = vsyncadd [#allocation4], 4294967040 }
  0xf3   :  { %1296 = dma.done.wait [#allocation9], 32  }
  0xf4   :  { %1297 = vsyncadd [#allocation9], 4294967264 }
  0xf5   :  { %794 = vsyncpa [#allocation3], 1 }
  0xf6   :  { %795 = vsyncpa [#allocation6], 1 }
  0xf7   :  { %796 = vsyncpa [#allocation4], 1 }
  0xf8   :  { %797 = vsyncpa [#allocation9], 1 }

</bundles_post_ra>
